<compile_context>
chip_gen: v7x
topology: tpu7x:2x2x1
jax: 0.10.0
libtpu: 0.0.40
codegen_flags: <defaults>
</compile_context>

<pallas_src>
import functools

import jax
import jax.numpy as jnp
import numpy as np
from jax.experimental import pallas as pl
from jax.experimental.pallas import tpu as pltpu


def _round_up(x, m):
    return ((x + m - 1) // m) * m


def gcn_kernel(adj_ref, xhi_ref, xlo_ref, w_ref, b_ref, o_ref, acc_ref, *,
               tile_k):
    # adj_ref: (TN, TK)   int8 tile of the (padded) 0/1 adjacency matrix
    # xhi_ref: (Np, D)    bf16 hi part of x   (grid-invariant, VMEM resident)
    # xlo_ref: (Np, D)    bf16 lo part of x   (grid-invariant, VMEM resident)
    # w_ref:   (D, Fp)    f32 weight          (grid-invariant)
    # b_ref:   (1, Fp)    f32 bias            (grid-invariant)
    # o_ref:   (TN, Fp)   f32 output row tile (resident across the k axis)
    # acc_ref: (TN, D)    f32 accumulator for adj_tile @ x   (VMEM scratch)
    k = pl.program_id(1)

    @pl.when(k == 0)
    def _():
        acc_ref[...] = jnp.zeros_like(acc_ref)

    # Slice this k-step's rows out of the resident feature block (x is DMA'd
    # from HBM exactly once for the whole grid).
    row0 = pl.multiple_of(k * tile_k, tile_k)
    x_hi = xhi_ref[pl.ds(row0, tile_k), :]
    x_lo = xlo_ref[pl.ds(row0, tile_k), :]

    # int8 -> bf16 via f32 (both converts are plain VPU ops; 0/1 is exact).
    adj_bf = adj_ref[...].astype(jnp.float32).astype(jnp.bfloat16)

    # Two native bf16 MXU dots with f32 accumulation: adj is exact in bf16 and
    # x_hi + x_lo ~= x to ~2^-17 relative, so this matches f32 math closely
    # without the multi-pass f32 MXU path.
    acc_ref[...] += (
        jnp.dot(adj_bf, x_hi, preferred_element_type=jnp.float32)
        + jnp.dot(adj_bf, x_lo, preferred_element_type=jnp.float32))

    @pl.when(k == pl.num_programs(1) - 1)
    def _():
        # Single projection per output row tile; f32 x f32 pinned to HIGHEST
        # precision so the layer keeps true-f32 semantics end to end.
        out = jnp.dot(acc_ref[...], w_ref[...],
                      preferred_element_type=jnp.float32,
                      precision=jax.lax.Precision.HIGHEST)
        out = out + b_ref[...]
        o_ref[...] = jnp.maximum(out, 0.0).astype(o_ref.dtype)


def prepare_adjacency(adj, *, tile_n=512, tile_k=2048):
    """One-time cast + pad of the dense 0/1 adjacency into the int8 layout the
    kernel streams.  This pass reads and rewrites the full N^2 matrix in HBM
    (comparable to one kernel invocation's HBM time), so cache the result and
    reuse it across forward passes / layers instead of re-running it per call.
    """
    n_rows, n_cols = adj.shape
    np_r = _round_up(n_rows, tile_n)
    np_c = _round_up(n_cols, tile_k)
    a = adj.astype(jnp.int8)
    if a.shape != (np_r, np_c):
        a = jnp.pad(a, ((0, np_r - n_rows), (0, np_c - n_cols)))
    return a


def graph_convolution(x, adj, weight, bias, *, tile_n=512, tile_k=2048):
    """relu(adj @ (x @ weight) + bias) with adj treated as a dense 0/1 matrix.

    tile_n: output-row tile (multiple of 32 for the int8 adj layout)
    tile_k: adjacency contraction tile (multiple of 128)

    Defaults (512 x 2048) give ~1 MiB int8 adj DMAs per grid step on every
    generation; on v7x pick tile_n so that N_pad // tile_n >= 2 (two TCs).
    `adj` may be passed pre-prepared via `prepare_adjacency` (int8, padded) to
    skip the wrapper-side N^2 cast/pad HBM pass.
    """
    N, D = x.shape
    Dw, F = weight.shape
    assert Dw == D
    assert tile_n % 32 == 0, "int8 adj tile: sublane dim must be a multiple of 32"
    assert tile_k % 128 == 0, "adj tile: lane dim must be a multiple of 128"

    np_r = _round_up(N, tile_n)   # adj rows / output rows
    np_c = _round_up(N, tile_k)   # adj cols / x rows
    f_p = _round_up(F, 128)       # lane-dense output / weight cols

    # Cached-adjacency fast path: no extra N^2 HBM pass before the kernel.
    if adj.dtype == jnp.int8 and adj.shape == (np_r, np_c):
        adj_p = adj
    else:
        adj_p = prepare_adjacency(adj, tile_n=tile_n, tile_k=tile_k)

    # hi/lo bf16 split of x (x ~= x_hi + x_lo to ~2^-17 relative). x is tiny
    # (N x D) so this one-off wrapper pass is negligible; it also halves the
    # resident VMEM footprint vs keeping x in f32.
    x_f32 = x.astype(jnp.float32)
    x_hi = x_f32.astype(jnp.bfloat16)
    x_lo = (x_f32 - x_hi.astype(jnp.float32)).astype(jnp.bfloat16)
    x_hi = jnp.pad(x_hi, ((0, np_c - N), (0, 0)))
    x_lo = jnp.pad(x_lo, ((0, np_c - N), (0, 0)))

    w_p = jnp.pad(weight.astype(jnp.float32), ((0, 0), (0, f_p - F)))
    b_p = jnp.pad(bias.astype(jnp.float32), (0, f_p - F)).reshape(1, f_p)

    grid = (np_r // tile_n, np_c // tile_k)

    cost = pl.CostEstimate(
        # two bf16 dots (hi + lo) for the contraction, one for the projection
        flops=4 * np_r * np_c * D + 2 * np_r * D * f_p,
        transcendentals=0,
        bytes_accessed=(adj_p.size                     # int8, streamed once
                        + (x_hi.size + x_lo.size) * 2  # resident, fetched once
                        + w_p.size * 4 + b_p.size * 4
                        + np_r * f_p * 4),             # output
    )

    out = pl.pallas_call(
        functools.partial(gcn_kernel, tile_k=tile_k),
        out_shape=jax.ShapeDtypeStruct((np_r, f_p), jnp.float32),
        grid_spec=pltpu.PrefetchScalarGridSpec(
            num_scalar_prefetch=0,
            grid=grid,
            in_specs=[
                pl.BlockSpec((tile_n, tile_k), lambda i, k: (i, k)),  # adj (int8)
                pl.BlockSpec((np_c, D), lambda i, k: (0, 0)),         # x_hi (resident)
                pl.BlockSpec((np_c, D), lambda i, k: (0, 0)),         # x_lo (resident)
                pl.BlockSpec((D, f_p), lambda i, k: (0, 0)),          # W (invariant)
                pl.BlockSpec((1, f_p), lambda i, k: (0, 0)),          # bias (invariant)
            ],
            out_specs=pl.BlockSpec((tile_n, f_p), lambda i, k: (i, 0)),
            scratch_shapes=[pltpu.VMEM((tile_n, D), jnp.float32)],
        ),
        compiler_params=pltpu.CompilerParams(
            dimension_semantics=("parallel", "arbitrary"),
        ),
        cost_estimate=cost,
    )(adj_p, x_hi, x_lo, w_p, b_p)

    # Padded rows beyond N hold relu(bias); slice them (and padded cols) off.
    return out[:N, :F]


def reference_f64(x, adj, weight, bias):
    """Ground-truth reference in float64 on the host (not the same-precision
    on-TPU jnp path), per the correctness review."""
    x64 = np.asarray(x, dtype=np.float64)
    a64 = np.asarray(adj, dtype=np.float64)
    w64 = np.asarray(weight, dtype=np.float64)
    b64 = np.asarray(bias, dtype=np.float64)
    out = a64 @ (x64 @ w64) + b64[None, :]
    return np.maximum(out, 0.0)


if __name__ == "__main__":
    # Small shapes implied by the module: N nodes, input_dim D, output_dim F.
    # N is deliberately not a tile multiple to exercise the padding path.
    N, D, F = 200, 32, 64

    key = jax.random.PRNGKey(0)
    kx, kadj, kw, kb = jax.random.split(key, 4)

    # Node features.
    x = jax.random.normal(kx, (N, D), dtype=jnp.float32)

    # Symmetric 0/1 adjacency (LongTensor in the PyTorch module).
    a = (jax.random.uniform(kadj, (N, N)) < 0.1).astype(jnp.int32)
    adj = jnp.maximum(a, a.T).astype(jnp.int32)

    # Glorot & Bengio uniform init, deterministic (matches reset_parameters).
    init_range = np.sqrt(6.0 / (D + F)).astype(np.float32)
    weight = jax.random.uniform(kw, (D, F), dtype=jnp.float32,
                                minval=-init_range, maxval=init_range)
    bias = jax.random.uniform(kb, (F,), dtype=jnp.float32,
                              minval=-init_range, maxval=init_range)

    # Small tiles here so the tiny demo still exercises multi-tile rows and a
    # multi-step k reduction (grid = (2, 2)); use the 512 x 2048 defaults at
    # real graph scale.  The adjacency is prepared (cast+padded to int8) once
    # up front — the wrapper detects it and skips its own N^2 pad/cast pass.
    tile_n, tile_k = 128, 128
    adj_prepared = prepare_adjacency(adj, tile_n=tile_n, tile_k=tile_k)
    adj_prepared = jax.block_until_ready(adj_prepared)

    out = graph_convolution(x, adj_prepared, weight, bias,
                            tile_n=tile_n, tile_k=tile_k)
    out = jax.block_until_ready(out)

    ref = reference_f64(x, adj, weight, bias)
    np.testing.assert_allclose(np.asarray(out, dtype=np.float64), ref,
                               rtol=1e-3, atol=1e-3)

    print("KERNEL_OK")
</pallas_src>

<mosaic_0001>
module attributes {stable_mosaic.version = 11 : i64} {
  func.func @gcn_kernel(%arg0: i32, %arg1: i32, %arg2: memref<128x128xi8, #tpu.memory_space<vmem>>, %arg3: memref<256x32xbf16, #tpu.memory_space<vmem>>, %arg4: memref<256x32xbf16, #tpu.memory_space<vmem>>, %arg5: memref<32x128xf32, #tpu.memory_space<vmem>>, %arg6: memref<1x128xf32, #tpu.memory_space<vmem>>, %arg7: memref<128x128xf32, #tpu.memory_space<vmem>>, %arg8: memref<128x32xf32, #tpu.memory_space<vmem>>) attributes {dimension_semantics = [#tpu.dimension_semantics<parallel>, #tpu.dimension_semantics<arbitrary>], iteration_bounds = array<i64: 2, 2>, scalar_prefetch = 0 : i64, scratch_operands = 1 : i64, tpu.core_type = #tpu.core_type<tc>, window_params = [{transform_indices = @transform_0, window_bounds = array<i64: 128, 128>}, {pipeline_mode = #tpu.pipeline_mode<synchronous>, transform_indices = @transform_1, window_bounds = array<i64: 256, 32>}, {pipeline_mode = #tpu.pipeline_mode<synchronous>, transform_indices = @transform_2, window_bounds = array<i64: 256, 32>}, {pipeline_mode = #tpu.pipeline_mode<synchronous>, transform_indices = @transform_3, window_bounds = array<i64: 32, 128>}, {pipeline_mode = #tpu.pipeline_mode<synchronous>, transform_indices = @transform_4, window_bounds = array<i64: 1, 128>}, {transform_indices = @transform_5, window_bounds = array<i64: 128, 128>}]} {
    %c0_i32 = arith.constant 0 : i32
    %0 = arith.cmpi eq, %arg1, %c0_i32 : i32
    %1 = arith.extui %0 : i1 to i32
    %c0_i32_0 = arith.constant 0 : i32
    %2 = arith.cmpi ne, %1, %c0_i32_0 : i32
    scf.if %2 {
      %cst_10 = arith.constant 0.000000e+00 : f32
      %21 = vector.broadcast %cst_10 : f32 to vector<128x32xf32>
      %c0_11 = arith.constant 0 : index
      %c0_12 = arith.constant 0 : index
      %22 = vector.load %arg8[%c0_11, %c0_12] : memref<128x32xf32, #tpu.memory_space<vmem>>, vector<128x32xf32>
      tpu.vector_store %arg8[%c0_11, %c0_12], %21 {strides = array<i32>} : memref<128x32xf32, #tpu.memory_space<vmem>>, vector<128x32xf32>,
    } else {
    }
    %c128_i32 = arith.constant 128 : i32
    %3 = arith.muli %arg1, %c128_i32 : i32
    %4 = tpu.assume_multiple %3, 128 : i32
    %5 = arith.index_cast %4 : i32 to index
    %c0 = arith.constant 0 : index
    %6 = vector.load %arg3[%5, %c0] : memref<256x32xbf16, #tpu.memory_space<vmem>>, vector<128x32xbf16>
    %7 = arith.index_cast %4 : i32 to index
    %c0_1 = arith.constant 0 : index
    %8 = vector.load %arg4[%7, %c0_1] : memref<256x32xbf16, #tpu.memory_space<vmem>>, vector<128x32xbf16>
    %c0_2 = arith.constant 0 : index
    %c0_3 = arith.constant 0 : index
    %9 = vector.load %arg2[%c0_2, %c0_3] : memref<128x128xi8, #tpu.memory_space<vmem>>, vector<128x128xi8>
    %10 = arith.sitofp %9 : vector<128x128xi8> to vector<128x128xf32>
    %11 = arith.truncf %10 : vector<128x128xf32> to vector<128x128xbf16>
    %c0_4 = arith.constant 0 : index
    %c0_5 = arith.constant 0 : index
    %12 = vector.load %arg8[%c0_4, %c0_5] : memref<128x32xf32, #tpu.memory_space<vmem>>, vector<128x32xf32>
    %cst = arith.constant dense<0.000000e+00> : vector<128x32xf32>
    %13 = tpu.matmul %11, %6, %cst {dimension_numbers = #tpu.dot_dimension_numbers<[1], [0], [0], [1], [0, 0, 1, 1], [], []>} : vector<128x128xbf16>, vector<128x32xbf16>, vector<128x32xf32> -> vector<128x32xf32>
    %cst_6 = arith.constant dense<0.000000e+00> : vector<128x32xf32>
    %14 = tpu.matmul %11, %8, %cst_6 {dimension_numbers = #tpu.dot_dimension_numbers<[1], [0], [0], [1], [0, 0, 1, 1], [], []>} : vector<128x128xbf16>, vector<128x32xbf16>, vector<128x32xf32> -> vector<128x32xf32>
    %15 = arith.addf %13, %14 : vector<128x32xf32>
    %16 = arith.addf %12, %15 : vector<128x32xf32>
    %c0_7 = arith.constant 0 : index
    %c0_8 = arith.constant 0 : index
    %17 = vector.load %arg8[%c0_7, %c0_8] : memref<128x32xf32, #tpu.memory_space<vmem>>, vector<128x32xf32>
    tpu.vector_store %arg8[%c0_7, %c0_8], %16 {strides = array<i32>} : memref<128x32xf32, #tpu.memory_space<vmem>>, vector<128x32xf32>,
    %c1_i32 = arith.constant 1 : i32
    %18 = arith.cmpi eq, %arg1, %c1_i32 : i32
    %19 = arith.extui %18 : i1 to i32
    %c0_i32_9 = arith.constant 0 : i32
    %20 = arith.cmpi ne, %19, %c0_i32_9 : i32
    scf.if %20 {
      %c0_10 = arith.constant 0 : index
      %c0_11 = arith.constant 0 : index
      %21 = vector.load %arg8[%c0_10, %c0_11] : memref<128x32xf32, #tpu.memory_space<vmem>>, vector<128x32xf32>
      %c0_12 = arith.constant 0 : index
      %c0_13 = arith.constant 0 : index
      %22 = vector.load %arg5[%c0_12, %c0_13] : memref<32x128xf32, #tpu.memory_space<vmem>>, vector<32x128xf32>
      %cst_14 = arith.constant dense<0.000000e+00> : vector<128x128xf32>
      %23 = tpu.matmul %21, %22, %cst_14 {dimension_numbers = #tpu.dot_dimension_numbers<[1], [0], [0], [1], [0, 0, 1, 1], [], []>, precision = #tpu.contract_precision<fp32>} : vector<128x32xf32>, vector<32x128xf32>, vector<128x128xf32> -> vector<128x128xf32>
      %c0_15 = arith.constant 0 : index
      %c0_16 = arith.constant 0 : index
      %24 = vector.load %arg6[%c0_15, %c0_16] : memref<1x128xf32, #tpu.memory_space<vmem>>, vector<1x128xf32>
      %25 = vector.broadcast %24 : vector<1x128xf32> to vector<128x128xf32>
      %26 = arith.addf %23, %25 : vector<128x128xf32>
      %cst_17 = arith.constant 0.000000e+00 : f32
      %27 = vector.broadcast %cst_17 : f32 to vector<128x128xf32>
      %28 = arith.maximumf %26, %27 : vector<128x128xf32>
      %c0_18 = arith.constant 0 : index
      %c0_19 = arith.constant 0 : index
      %29 = vector.load %arg7[%c0_18, %c0_19] : memref<128x128xf32, #tpu.memory_space<vmem>>, vector<128x128xf32>
      tpu.vector_store %arg7[%c0_18, %c0_19], %28 {strides = array<i32>} : memref<128x128xf32, #tpu.memory_space<vmem>>, vector<128x128xf32>,
    } else {
    }
    return
  }
  func.func @transform_0(%arg0: i32, %arg1: i32) -> (i32, i32) {
    %c0_i32 = arith.constant 0 : i32
    return %arg0, %arg1 : i32, i32
  }
  func.func @transform_1(%arg0: i32, %arg1: i32) -> (i32, i32) {
    %c0_i32 = arith.constant 0 : i32
    %c0_i32_0 = arith.constant 0 : i32
    %c0_i32_1 = arith.constant 0 : i32
    return %c0_i32, %c0_i32_0 : i32, i32
  }
  func.func @transform_2(%arg0: i32, %arg1: i32) -> (i32, i32) {
    %c0_i32 = arith.constant 0 : i32
    %c0_i32_0 = arith.constant 0 : i32
    %c0_i32_1 = arith.constant 0 : i32
    return %c0_i32, %c0_i32_0 : i32, i32
  }
  func.func @transform_3(%arg0: i32, %arg1: i32) -> (i32, i32) {
    %c0_i32 = arith.constant 0 : i32
    %c0_i32_0 = arith.constant 0 : i32
    %c0_i32_1 = arith.constant 0 : i32
    return %c0_i32, %c0_i32_0 : i32, i32
  }
  func.func @transform_4(%arg0: i32, %arg1: i32) -> (i32, i32) {
    %c0_i32 = arith.constant 0 : i32
    %c0_i32_0 = arith.constant 0 : i32
    %c0_i32_1 = arith.constant 0 : i32
    return %c0_i32, %c0_i32_0 : i32, i32
  }
  func.func @transform_5(%arg0: i32, %arg1: i32) -> (i32, i32) {
    %c0_i32 = arith.constant 0 : i32
    %c0_i32_0 = arith.constant 0 : i32
    return %arg0, %c0_i32 : i32, i32
  }
}

</mosaic_0001>

<bundles_post_ra>
// kernel: tpu_custom_call.1
= control target key start
LH: loop header
LB: loop body
LE: loop exit
PB: predicated region body
PF: predicated region fallthrough
CT: control target
= control target key end

     0   :  { %10 = vsyncpa [#allocation5], 0  ;;  %s3436_s0 = inlined_call_operand.vmem [shape: s8[256,256], index: 0, kind: input, shape index: {}]   ;;  %s3437_s1 = inlined_call_operand.vmem [shape: bf16[256,32], index: 1, kind: input, shape index: {}]   ;;  %s3438_s2 = inlined_call_operand.vmem [shape: bf16[256,32], index: 2, kind: input, shape index: {}]   ;;  %s3439_s3 = inlined_call_operand.vmem [shape: f32[32,128], index: 3, kind: input, shape index: {}]   ;;  %s3440_s4 = inlined_call_operand.vmem [shape: f32[1,128], index: 4, kind: input, shape index: {}]   ;;  %s3441_s5 = inlined_call_operand.hbm [shape: f32[256,128], index: 5, kind: output, shape index: {}]  }
   0x1   :  { %12 = vsyncpa [#allocation5 + $0x1], 0  ;;  %s2900_s18 = smov 0   ;;  %s2902_s19 = smov 0  }
   0x2   :  { %s2904_s20 = smov 0   ;;  %s2906_s21 = smov 0  }
   0x3   :  { %s2908_s22 = smov 0   ;;  %s2910_s23 = smov 0  }
   0x4   :  { %s2912_s24 = smov 0   ;;  %s2914_s25 = smov 0  }
   0x5   :  { %s2916_s26 = smov 0   ;;  %s2918_s27 = smov 0  }
   0x6 LB: > { %s2040_s28 = sadd.s32 4294967295, %s2864_s27   ;;  %s2041_s29 = sadd.s32 4294967294, %s2864_s27   ;;  %s2864_s27 = sphi %s2918_s27, %s18_s27   ;;  %s2860_s26 = sphi %s2916_s26, %s3458_s26   ;;  %s2856_s25 = sphi %s2914_s25, %s3457_s25   ;;  %s2852_s24 = sphi %s2912_s24, %s3456_s24   ;;  %s2848_s23 = sphi %s2910_s23, %s3455_s23   ;;  %s2844_s22 = sphi %s2908_s22, %s3454_s22   ;;  %s2840_s21 = sphi %s2906_s21, %s3453_s21   ;;  %s2836_s20 = sphi %s2904_s20, %s3452_s20   ;;  %s2832_s19 = sphi %s2902_s19, %s3451_s19   ;;  %s2828_s18 = sphi %s2900_s18, %s3450_s18  }
   0x7   : > { %s27_s30 = sadd.s32 1, %s2856_s25  ;;  %s30_s6 = sadd.s32 1, %s2860_s26 }
   0x8   : > { %p28_p0 = scmp.ge.s32.totalorder %s27_s30, 2  ;;  %s39_s7 = sadd.s32 1, %s2844_s22 }
   0x9   : > { %p46_p1 = scmp.ne.s32.totalorder %s2844_s22, %s2840_s21  ;;  %p47_p2 = scmp.eq.s32.totalorder %s2864_s27, 0 }
   0xa   : > { %s3460_s30 = smov (%p28_p0, %s27_s30), 0  ;;  %s3462_s6 = smov (!%p28_p0, %s30_s6), %s2860_s26 }
   0xb   : > { %s35_s8 = ssub.s32 %s2856_s25, %s3460_s30  ;;  %p2963_p3 = por %p47_p2, %p46_p1 }
   0xc   : > { %p32_p4 = scmp.ge.s32.totalorder %s3462_s6, 2  ;;  %s149_s10 = sadd.s32 1, %s2836_s20 }
   0xd   : > { %p159_p5 = scmp.ne.s32.totalorder %s2836_s20, %s2832_s19  ;;  %p160_p6 = scmp.eq.s32.totalorder %s2040_s28, 3 }
   0xe   : > { %s3464_s6 = smov (%p32_p4, %s3462_s6), 0  ;;  %p165_p8 = scmp.ne.s32.totalorder %s2832_s19, %s2828_s18 }
   0xf   : > { %3445 = sst [smem:[#allocation7_spill]] %s3464_s6  ;;  %p2972_p7 = por %p160_p6, %p159_p5 }
  0x10   : > { %s34_s12 = ssub.s32 %s2860_s26, %s3464_s6  ;;  %p166_p9 = scmp.eq.s32.totalorder %s2041_s29, 3 }
  0x11   : > { %s36_s13 = sor.u32 %s35_s8, %s34_s12  ;;  %p147_p10 = scmp.eq.s32.totalorder %s34_s12, 0 }
  0x12   : > { %p37_p11 = scmp.eq.s32.totalorder %s36_s13, 0  ;;  %p2980_p12 = por %p166_p9, %p165_p8 }
  0x13   : > { %s2985_s15 = scalar_select %p147_p10, %s2836_s20, %s149_s10  }
  0x14   : > { %s2988_s16 = scalar_select %p37_p11, %s2844_s22, %s39_s7  }
  0x15   : > { %p2043_p13 = scmp.ge.s32.totalorder %s2864_s27, 4 }
  0x17   : > { %194 = sbr.rel (%p2043_p13) target bundleno = 38 (0x26), region = 32 }
  0x1e   : > { %197 = sbr.rel (!%p2963_p3) target bundleno = 38 (0x26), region = 36  ;;  %s199_s17 = sand.u32 (%p2963_p3), 1, %s2844_s22  }
  0x1f   : > { %s2078_s28 = sshll.u32 (%p2963_p3), %s2860_s26, 3  ;;  %s2044_s29 = sshll.u32 (%p2963_p3), %s199_s17, 5 }
  0x20   : > { %s204_s8 = sadd.s32 (%p2963_p3), %s2856_s25, %s2078_s28  ;;  %s201_s7 = scalar_lea.vmem (%p2963_p3), [#allocation3], %s2044_s29 }
  0x21   : > { %s2047_s12 = sshll.u32 (%p2963_p3), %s204_s8, 3 }
  0x22   : > { %s206_s10 = scalar_lea.vmem (%p2963_p3), %s3436_s0, %s2047_s12 }
  0x23   : > { %v240_v0 = vld [vmem:[%s206_s10] sm:$0xff] (%p2963_p3)  ;;  %v242_v1 = vld [vmem:[%s206_s10 + $0x10] sm:$0xff] (%p2963_p3) }
  0x24   : > { %v244_v2 = vld [vmem:[%s206_s10 + $0x20] sm:$0xff] (%p2963_p3)  ;;  %241 = vst [vmem:[%s201_s7] sm:$0xff] (%p2963_p3), %v240_v0  ;;  %243 = vst [vmem:[%s201_s7 + $0x8] sm:$0xff] (%p2963_p3), %v242_v1  ;;  %v246_v3 = vld [vmem:[%s206_s10 + $0x30] sm:$0xff] (%p2963_p3) }
  0x25   : > { %245 = vst [vmem:[%s201_s7 + $0x10] sm:$0xff] %v244_v2  ;;  %247 = vst [vmem:[%s201_s7 + $0x18] sm:$0xff] %v246_v3 }
  0x26 PF: > { %p2048_p0 = scmp.ge.s32.totalorder %s2864_s27, 1  ;;  %p252_p1 = scmp.lt.s32.totalorder %s2864_s27, 5 }
  0x28   : > { %p253_p2 = pnand %p2048_p0, %p252_p1 }
  0x29   : > { %s259_s6 = sand.u32 (!%p253_p2), 1, %s2840_s21   ;;  %s3443_s9 = sand.u32 (!%p253_p2), 1, %s2832_s19  }
  0x2a   : > { %256 = sbr.rel (%p253_p2) target bundleno = 676 (0x2a4), region = 74  ;;  %s2049_s17 = sshll.u32 (!%p253_p2), %s259_s6, 5 }
  0x2b   : > { %s2050_s28 = sshll.u32 (!%p253_p2), %s3443_s9, 7  ;;  %s3005_s29 = scalar_lea.vmem (!%p253_p2), [#allocation3], %s2049_s17 }
  0x2c   : > { %s3007_s8 = scalar_lea.vmem (!%p253_p2), [#allocation4], %s2050_s28  ;;  %p2051_p3 = scmp.ne.s32.totalorder (!%p253_p2), %s2848_s23, 0 }
  0x31   : > { %292 = sbr.rel (%p2051_p3) target bundleno = 58 (0x3a), region = 82  ;;  %vm293_vm0 = vcmask (!%p2051_p3), 261120   ;;  %v2866_v4 = vmov (!%p2051_p3), 0.0  }
  0x32   : > { %294 = vst.msk [vmem:[#allocation2] sm:$0xff] (!%p2051_p3), %vm293_vm0, %v2866_v4  ;;  %295 = vst.msk [vmem:[#allocation2 + $0x8] sm:$0xff] (!%p2051_p3), %vm293_vm0, %v2866_v4 }
  0x33   : > { %296 = vst.msk [vmem:[#allocation2 + $0x10] sm:$0xff] (!%p2051_p3), %vm293_vm0, %v2866_v4  ;;  %297 = vst.msk [vmem:[#allocation2 + $0x18] sm:$0xff] (!%p2051_p3), %vm293_vm0, %v2866_v4 }
  0x34   : > { %298 = vst.msk [vmem:[#allocation2 + $0x20] sm:$0xff] (!%p2051_p3), %vm293_vm0, %v2866_v4  ;;  %299 = vst.msk [vmem:[#allocation2 + $0x28] sm:$0xff] (!%p2051_p3), %vm293_vm0, %v2866_v4 }
  0x35   : > { %300 = vst.msk [vmem:[#allocation2 + $0x30] sm:$0xff] (!%p2051_p3), %vm293_vm0, %v2866_v4  ;;  %301 = vst.msk [vmem:[#allocation2 + $0x38] sm:$0xff] (!%p2051_p3), %vm293_vm0, %v2866_v4 }
  0x36   : > { %302 = vst.msk [vmem:[#allocation2 + $0x40] sm:$0xff] (!%p2051_p3), %vm293_vm0, %v2866_v4  ;;  %303 = vst.msk [vmem:[#allocation2 + $0x48] sm:$0xff] (!%p2051_p3), %vm293_vm0, %v2866_v4 }
  0x37   : > { %304 = vst.msk [vmem:[#allocation2 + $0x50] sm:$0xff] (!%p2051_p3), %vm293_vm0, %v2866_v4  ;;  %305 = vst.msk [vmem:[#allocation2 + $0x58] sm:$0xff] (!%p2051_p3), %vm293_vm0, %v2866_v4 }
  0x38   : > { %306 = vst.msk [vmem:[#allocation2 + $0x60] sm:$0xff] %vm293_vm0, %v2866_v4  ;;  %307 = vst.msk [vmem:[#allocation2 + $0x68] sm:$0xff] %vm293_vm0, %v2866_v4 }
  0x39   : > { %308 = vst.msk [vmem:[#allocation2 + $0x70] sm:$0xff] %vm293_vm0, %v2866_v4  ;;  %309 = vst.msk [vmem:[#allocation2 + $0x78] sm:$0xff] %vm293_vm0, %v2866_v4 }
  0x3a PF: > { %s2052_s21 = sshll.u32 %s2848_s23, 7  ;;  %v349_v5 = vld [vmem:[%s3005_s29] sm:$0xff]  ;;  %v350_v23 = vld [vmem:[%s3005_s29 + $0x8] sm:$0xff]  ;;  %v351_v26 = vld [vmem:[%s3005_s29 + $0x10] sm:$0xff]  ;;  %vm683_vm1 = vcmask 261120   ;;  %p2071_p4 = scmp.ne.s32.totalorder %s2848_s23, 1 }
  0x3b   : > { %s311_s12 = sshra.s32 %s2052_s21, 3  ;;  %v353_v6 = vunpack.c.l.s8.bf16 %v349_v5  ;;  %v354_v24 = vunpack.c.h.s8.bf16 %v349_v5  ;;  %v355_v25 = vunpack.c.l.s8.bf16 %v350_v23  ;;  %v356_v27 = vunpack.c.h.s8.bf16 %v350_v23  ;;  %v352_v29 = vld [vmem:[%s3005_s29 + $0x18] sm:$0xff]  ;;  %v361_v38 = vld [vmem:[#allocation2] sm:$0xff]  ;;  %v362_v47 = vld [vmem:[#allocation2 + $0x8] sm:$0xff] }
  0x3c   : > { %s2053_s13 = sshll.u32 %s311_s12, 2  ;;  %v357_v28 = vunpack.c.l.s8.bf16 %v351_v26  ;;  %v358_v30 = vunpack.c.h.s8.bf16 %v351_v26  ;;  %v359_v31 = vunpack.c.l.s8.bf16 %v352_v29  ;;  %v360_v32 = vunpack.c.h.s8.bf16 %v352_v29  ;;  %v363_v34 = vld [vmem:[#allocation2 + $0x10] sm:$0xff]  ;;  %v364_v42 = vld [vmem:[#allocation2 + $0x18] sm:$0xff] }
  0x3d   : > { %s3031_s6 = scalar_lea.vmem %s3438_s2, %s2053_s13  ;;  %s3036_s9 = scalar_lea.vmem %s3437_s1, %s2053_s13  ;;  %2248 = vmatprep.mubr.bf16.mxu1 %v353_v6  ;;  %2280 = vmatprep.mubr.bf16.mxu0 %v353_v6  ;;  %v365_v58 = vld [vmem:[#allocation2 + $0x20] sm:$0xff]  ;;  %v366_v3 = vld [vmem:[#allocation2 + $0x28] sm:$0xff] }
  0x3e   : > { %v2738_v7 = vld [vmem:[%s3031_s6] sm:$0xff]   ;;  %v2740_v9 = vld [vmem:[%s3031_s6 + $0x8] sm:$0xff]   ;;  %v2742_v11 = vld [vmem:[%s3031_s6 + $0x10] sm:$0xff]  }
  0x3f   : > { %v2739_v8 = vld [vmem:[%s3036_s9] sm:$0xff]   ;;  %2232 = vmatprep.subr.bf16.mxu1 %v2738_v7  ;;  %v2741_v10 = vld [vmem:[%s3036_s9 + $0x8] sm:$0xff]   ;;  %v2743_v12 = vld [vmem:[%s3036_s9 + $0x10] sm:$0xff]  }
  0x40   : > { %2264 = vmatprep.subr.bf16.mxu0 %v2739_v8  ;;  %2233 = vmatpush3.bf16.msra.mxu1 %v2738_v7  ;;  %v2744_v13 = vld [vmem:[%s3031_s6 + $0x18] sm:$0xff]   ;;  %v2746_v15 = vld [vmem:[%s3031_s6 + $0x20] sm:$0xff]   ;;  %v2748_v17 = vld [vmem:[%s3031_s6 + $0x28] sm:$0xff]  }
  0x41   : > { %2265 = vmatpush3.bf16.msra.mxu0 %v2739_v8  ;;  %2234 = vmatprep.subr.bf16.mxu1 %v2740_v9  ;;  %v2745_v14 = vld [vmem:[%s3036_s9 + $0x18] sm:$0xff]   ;;  %v2747_v16 = vld [vmem:[%s3036_s9 + $0x20] sm:$0xff]   ;;  %v2749_v18 = vld [vmem:[%s3036_s9 + $0x28] sm:$0xff]  }
  0x42   : > { %2266 = vmatprep.subr.bf16.mxu0 %v2741_v10  ;;  %v2750_v19 = vld [vmem:[%s3031_s6 + $0x30] sm:$0xff]   ;;  %v2752_v21 = vld [vmem:[%s3031_s6 + $0x38] sm:$0xff]   ;;  %v370_v23 = vld [vmem:[#allocation2 + $0x48] sm:$0xff] }
  0x43   : > { %v2751_v20 = vld [vmem:[%s3036_s9 + $0x30] sm:$0xff]   ;;  %v2753_v22 = vld [vmem:[%s3036_s9 + $0x38] sm:$0xff]  }
  0x44   : > { %2235 = vmatpush3.bf16.msra.mxu1 %v2740_v9  ;;  %v367_v54 = vld [vmem:[#allocation2 + $0x30] sm:$0xff]  ;;  %v368_v62 = vld [vmem:[#allocation2 + $0x38] sm:$0xff] }
  0x45   : > { %2267 = vmatpush3.bf16.msra.mxu0 %v2741_v10  ;;  %2236 = vmatprep.subr.bf16.mxu1 %v2742_v11  ;;  %v371_v10 = vld [vmem:[#allocation2 + $0x50] sm:$0xff] }
  0x46   : > { %2268 = vmatprep.subr.bf16.mxu0 %v2743_v12 }
  0x48   : > { %2237 = vmatpush3.bf16.msra.mxu1 %v2742_v11 }
  0x49   : > { %2269 = vmatpush3.bf16.msra.mxu0 %v2743_v12  ;;  %2238 = vmatprep.subr.bf16.mxu1 %v2744_v13 }
  0x4a   : > { %2270 = vmatprep.subr.bf16.mxu0 %v2745_v14 }
  0x4c   : > { %2239 = vmatpush3.bf16.msra.mxu1 %v2744_v13 }
  0x4d   : > { %2271 = vmatpush3.bf16.msra.mxu0 %v2745_v14  ;;  %2240 = vmatprep.subr.bf16.mxu1 %v2746_v15  ;;  %v369_v14 = vld [vmem:[#allocation2 + $0x40] sm:$0xff] }
  0x4e   : > { %2272 = vmatprep.subr.bf16.mxu0 %v2747_v16 }
  0x50   : > { %2241 = vmatpush3.bf16.msra.mxu1 %v2746_v15 }
  0x51   : > { %2273 = vmatpush3.bf16.msra.mxu0 %v2747_v16  ;;  %2242 = vmatprep.subr.bf16.mxu1 %v2748_v17 }
  0x52   : > { %2274 = vmatprep.subr.bf16.mxu0 %v2749_v18 }
  0x54   : > { %2243 = vmatpush3.bf16.msra.mxu1 %v2748_v17 }
  0x55   : > { %2275 = vmatpush3.bf16.msra.mxu0 %v2749_v18  ;;  %2244 = vmatprep.subr.bf16.mxu1 %v2750_v19  ;;  %v372_v18 = vld [vmem:[#allocation2 + $0x58] sm:$0xff] }
  0x56   : > { %2276 = vmatprep.subr.bf16.mxu0 %v2751_v20 }
  0x58   : > { %2245 = vmatpush3.bf16.msra.mxu1 %v2750_v19 }
  0x59   : > { %2277 = vmatpush3.bf16.msra.mxu0 %v2751_v20  ;;  %2246 = vmatprep.subr.bf16.mxu1 %v2752_v21 }
  0x5a   : > { %2278 = vmatprep.subr.bf16.mxu0 %v2753_v22 }
  0x5c   : > { %2247 = vmatpush3.bf16.msra.mxu1 %v2752_v21 }
  0x5d   : > { %2279 = vmatpush3.bf16.msra.mxu0 %v2753_v22 }
  0x5f   : > { %2249 = vmatmul.mubr.bf16.vlgmr.msra.gmra.mrb[0].mxu1 %v354_v24 }
  0x60   : > { %2281 = vmatmul.mubr.bf16.vlgmr.msra.gmra.mrb[0].mxu0 %v354_v24  ;;  %2252 = vmatprep.mubr.bf16.mxu1 %v355_v25 }
  0x61   : > { %2284 = vmatprep.mubr.bf16.mxu0 %v355_v25 }
  0x67   : > { %2253 = vmatmul.mubr.bf16.gmra.mrb[4].mxu1 %v356_v27 }
  0x68   : > { %2285 = vmatmul.mubr.bf16.gmra.mrb[4].mxu0 %v356_v27  ;;  %2256 = vmatprep.mubr.bf16.mxu1 %v357_v28 }
  0x69   : > { %2288 = vmatprep.mubr.bf16.mxu0 %v357_v28 }
  0x6f   : > { %2257 = vmatmul.mubr.bf16.gmra.mrb[8].mxu1 %v358_v30 }
  0x70   : > { %2289 = vmatmul.mubr.bf16.gmra.mrb[8].mxu0 %v358_v30  ;;  %2260 = vmatprep.mubr.bf16.mxu1 %v359_v31  ;;  %v375_v30 = vld [vmem:[#allocation2 + $0x70] sm:$0xff] }
  0x71   : > { %2292 = vmatprep.mubr.bf16.mxu0 %v359_v31 }
  0x77   : > { %2261 = vmatmul.mubr.bf16.gmra.mrb[12].mxu1 %v360_v32 }
  0x78   : > { %2293 = vmatmul.mubr.bf16.gmra.mrb[12].mxu0 %v360_v32 }
 0x132   : > { %v2250_v33 = vpop.f32.mrb[0].mxu1 }
 0x133   : > { %v2282_v35 = vpop.f32.mrb[0].mxu0  ;;  %v459_v36 = vpop.f32.mrb[1].mxu1 }
 0x134   : > { %v613_v37 = vadd.f32 %v2282_v35, %v2250_v33  ;;  %v604_v39 = vpop.f32.mrb[1].mxu0  ;;  %v2251_v40 = vpop.f32.mrb[2].mxu1 }
 0x135   : > { %v605_v41 = vadd.f32 %v604_v39, %v459_v36  ;;  %v2283_v43 = vpop.f32.mrb[2].mxu0  ;;  %v462_v44 = vpop.f32.mrb[3].mxu1 }
 0x136   : > { %v669_v45 = vadd.f32 %v613_v37, %v363_v34  ;;  %v616_v46 = vadd.f32 %v2283_v43, %v2251_v40  ;;  %v607_v48 = vpop.f32.mrb[3].mxu0  ;;  %v373_v34 = vld [vmem:[#allocation2 + $0x60] sm:$0xff]  ;;  %v374_v43 = vld [vmem:[#allocation2 + $0x68] sm:$0xff] }
 0x137   : > { %v667_v49 = vadd.f32 %v605_v41, %v361_v38  ;;  %v608_v50 = vadd.f32 %v607_v48, %v462_v44  ;;  %v376_v38 = vld [vmem:[#allocation2 + $0x78] sm:$0xff] }
 0x138   : > { %686 = vst.msk [vmem:[#allocation2 + $0x10] sm:$0xff] %vm683_vm1, %v669_v45  ;;  %v670_v51 = vadd.f32 %v616_v46, %v364_v42 }
 0x139   : > { %684 = vst.msk [vmem:[#allocation2] sm:$0xff] %vm683_vm1, %v667_v49  ;;  %v668_v52 = vadd.f32 %v608_v50, %v362_v47  ;;  %v720_v49 = vld [vmem:[%s3439_s3] sm:$0xff] (!%p2071_p4)  ;;  %v721_v50 = vld [vmem:[%s3439_s3 + $0x8] sm:$0xff] (!%p2071_p4) }
 0x13a   : > { %687 = vst.msk [vmem:[#allocation2 + $0x18] sm:$0xff] %vm683_vm1, %v670_v51  ;;  %v2254_v53 = vpop.f32.mrb[4].mxu1  ;;  %v3083_v51 = vld [vmem:[%s3439_s3 + $0x10] sm:$0xff] (!%p2071_p4) }
 0x13b   : > { %685 = vst.msk [vmem:[#allocation2 + $0x8] sm:$0xff] %vm683_vm1, %v668_v52  ;;  %v2286_v55 = vpop.f32.mrb[4].mxu0  ;;  %v475_v56 = vpop.f32.mrb[5].mxu1  ;;  %v780_v52 = vand.u32 (!%p2071_p4), 4294901760, %v720_v49 }
 0x13c   : > { %v629_v57 = vadd.f32 %v2286_v55, %v2254_v53  ;;  %v620_v59 = vpop.f32.mrb[5].mxu0  ;;  %v2255_v60 = vpop.f32.mrb[6].mxu1  ;;  %v783_v53 = vand.u32 (!%p2071_p4), 4294901760, %v721_v50  ;;  %v786_v55 = vand.u32 (!%p2071_p4), 4294901760, %v3083_v51 }
 0x13d   : > { %v621_v61 = vadd.f32 %v620_v59, %v475_v56  ;;  %v2287_v63 = vpop.f32.mrb[6].mxu0  ;;  %v478_v0 = vpop.f32.mrb[7].mxu1 }
 0x13e   : > { %v673_v1 = vadd.f32 %v629_v57, %v367_v54  ;;  %v632_v2 = vadd.f32 %v2287_v63, %v2255_v60  ;;  %v623_v4 = vpop.f32.mrb[7].mxu0  ;;  %v3088_v54 = vld [vmem:[%s3439_s3 + $0x18] sm:$0xff] (!%p2071_p4)  ;;  %v3094_v63 = vpack.c.bf16 (!%p2071_p4), %v783_v53, %v780_v52 }
 0x13f   : > { %v671_v5 = vadd.f32 %v621_v61, %v365_v58  ;;  %v624_v6 = vadd.f32 %v623_v4, %v478_v0  ;;  %v789_v58 = vand.u32 (!%p2071_p4), 4294901760, %v3088_v54  ;;  %v706_v61 = vld [vmem:[#allocation2 + $0x10] sm:$0xff] (!%p2071_p4) }
 0x140   : > { %690 = vst.msk [vmem:[#allocation2 + $0x30] sm:$0xff] %vm683_vm1, %v673_v1  ;;  %v674_v7 = vadd.f32 %v632_v2, %v368_v62  ;;  %v704_v56 = vld [vmem:[#allocation2] sm:$0xff] (!%p2071_p4)  ;;  %v3100_v2 = vsub.f32 (!%p2071_p4), %v720_v49, %v780_v52  ;;  %2489 = vmatprep.subr.bf16.mxu1 (!%p2071_p4), %v3094_v63  ;;  %2513 = vmatprep.subr.bf16.mxu0 (!%p2071_p4), %v3094_v63 }
 0x141   : > { %688 = vst.msk [vmem:[#allocation2 + $0x20] sm:$0xff] %vm683_vm1, %v671_v5  ;;  %v672_v8 = vadd.f32 %v624_v6, %v366_v3  ;;  %v732_v59 = vsel (!%p2071_p4), %vm683_vm1, %v704_v56, 0  ;;  %v707_v62 = vld [vmem:[#allocation2 + $0x18] sm:$0xff] (!%p2071_p4)  ;;  %v3106_v5 = vpack.c.bf16 (!%p2071_p4), %v789_v58, %v786_v55  ;;  %v3108_v6 = vsub.f32 (!%p2071_p4), %v721_v50, %v783_v53  ;;  %2491 = vmatpush3.bf16.msra.mxu1 (!%p2071_p4), %v3094_v63 }
 0x142   : > { %691 = vst.msk [vmem:[#allocation2 + $0x38] sm:$0xff] %vm683_vm1, %v674_v7  ;;  %v2258_v9 = vpop.f32.mrb[8].mxu1  ;;  %v705_v57 = vld [vmem:[#allocation2 + $0x8] sm:$0xff] (!%p2071_p4)  ;;  %v3096_v0 = vand.u32 (!%p2071_p4), 4294901760, %v732_v59  ;;  %v738_v7 = vsel (!%p2071_p4), %vm683_vm1, %v706_v61, 0  ;;  %2515 = vmatpush3.bf16.msra.mxu0 (!%p2071_p4), %v3094_v63 }
 0x143   : > { %689 = vst.msk [vmem:[#allocation2 + $0x28] sm:$0xff] %vm683_vm1, %v672_v8  ;;  %v2290_v11 = vpop.f32.mrb[8].mxu0  ;;  %v491_v12 = vpop.f32.mrb[9].mxu1  ;;  %v735_v60 = vsel (!%p2071_p4), %vm683_vm1, %v705_v57, 0  ;;  %v741_v8 = vsel (!%p2071_p4), %vm683_vm1, %v707_v62, 0  ;;  %2493 = vmatprep.subr.bf16.mxu1 (!%p2071_p4), %v3106_v5  ;;  %2517 = vmatprep.subr.bf16.mxu0 (!%p2071_p4), %v3106_v5 }
 0x144   : > { %v645_v13 = vadd.f32 %v2290_v11, %v2258_v9  ;;  %v636_v15 = vpop.f32.mrb[9].mxu0  ;;  %v2259_v16 = vpop.f32.mrb[10].mxu1  ;;  %v3098_v1 = vand.u32 (!%p2071_p4), 4294901760, %v735_v60  ;;  %v3115_v9 = vsub.f32 (!%p2071_p4), %v732_v59, %v3096_v0  ;;  %v1011_v11 = vand.u32 (!%p2071_p4), 4294901760, %v3100_v2 }
 0x145   : > { %v637_v17 = vadd.f32 %v636_v15, %v491_v12  ;;  %v2291_v19 = vpop.f32.mrb[10].mxu0  ;;  %v494_v20 = vpop.f32.mrb[11].mxu1  ;;  %v3121_v12 = vand.u32 (!%p2071_p4), 4294901760, %v738_v7  ;;  %2495 = vmatpush3.bf16.msra.mxu1 (!%p2071_p4), %v3106_v5 }
 0x146   : > { %v677_v21 = vadd.f32 %v645_v13, %v371_v10  ;;  %v648_v22 = vadd.f32 %v2291_v19, %v2259_v16  ;;  %v639_v24 = vpop.f32.mrb[11].mxu0  ;;  %v3118_v10 = vsub.f32 (!%p2071_p4), %v735_v60, %v3098_v1  ;;  %v1018_v13 = vand.u32 (!%p2071_p4), 4294901760, %v3108_v6  ;;  %2519 = vmatpush3.bf16.msra.mxu0 (!%p2071_p4), %v3106_v5 }
 0x147   : > { %v675_v25 = vadd.f32 %v637_v17, %v369_v14  ;;  %v640_v26 = vadd.f32 %v639_v24, %v494_v20  ;;  %v3126_v14 = vand.u32 (!%p2071_p4), 4294901760, %v741_v8  ;;  %v850_v17 = vand.u32 (!%p2071_p4), 4294901760, %v3115_v9 }
 0x148   : > { %694 = vst.msk [vmem:[#allocation2 + $0x50] sm:$0xff] %vm683_vm1, %v677_v21  ;;  %v678_v27 = vadd.f32 %v648_v22, %v372_v18  ;;  %v708_v3 = vld [vmem:[#allocation2 + $0x20] sm:$0xff] (!%p2071_p4)  ;;  %v860_v18 = vand.u32 (!%p2071_p4), 4294901760, %v3118_v10  ;;  %v1012_v19 = vsub.f32 (!%p2071_p4), %v3100_v2, %v1011_v11  ;;  %v3136_v20 = vsub.f32 (!%p2071_p4), %v738_v7, %v3121_v12 }
 0x149   : > { %692 = vst.msk [vmem:[#allocation2 + $0x40] sm:$0xff] %vm683_vm1, %v675_v25  ;;  %v676_v28 = vadd.f32 %v640_v26, %v370_v23  ;;  %v744_v15 = vsel (!%p2071_p4), %vm683_vm1, %v708_v3, 0  ;;  %v1019_v21 = vsub.f32 (!%p2071_p4), %v3108_v6, %v1018_v13  ;;  %v2520_v22 = vpack.c.bf16 (!%p2071_p4), %v1018_v13, %v1011_v11  ;;  %v710_v25 = vld [vmem:[#allocation2 + $0x30] sm:$0xff] (!%p2071_p4)  ;;  %2400 = vmatprep.mubr.f32.mxu0 (!%p2071_p4), %v850_v17 }
 0x14a   : > { %695 = vst.msk [vmem:[#allocation2 + $0x58] sm:$0xff] %vm683_vm1, %v678_v27  ;;  %v2262_v29 = vpop.f32.mrb[12].mxu1  ;;  %v709_v4 = vld [vmem:[#allocation2 + $0x28] sm:$0xff] (!%p2071_p4)  ;;  %v3140_v23 = vsub.f32 (!%p2071_p4), %v741_v8, %v3126_v14  ;;  %v3142_v24 = vand.u32 (!%p2071_p4), 4294901760, %v744_v15  ;;  %v851_v26 = vsub.f32 (!%p2071_p4), %v3115_v9, %v850_v17  ;;  %v861_v27 = vsub.f32 (!%p2071_p4), %v3118_v10, %v860_v18  ;;  %2401 = vmatmul.mubr.f32.vlgmr.msra.gmra.mrb[0].mxu0 (!%p2071_p4), %v860_v18 }
 0x14b   : > { %693 = vst.msk [vmem:[#allocation2 + $0x48] sm:$0xff] %vm683_vm1, %v676_v28  ;;  %v2294_v31 = vpop.f32.mrb[12].mxu0  ;;  %v507_v32 = vpop.f32.mrb[13].mxu1  ;;  %v747_v16 = vsel (!%p2071_p4), %vm683_vm1, %v709_v4, 0  ;;  %v1013_v28 = vand.u32 (!%p2071_p4), 4294901760, %v1012_v19  ;;  %2521 = vmatprep.subr.bf16.mxu0 (!%p2071_p4), %v2520_v22  ;;  %v3179_v60 = vsub.f32 (!%p2071_p4), %v3083_v51, %v786_v55  ;;  %v3195_v55 = vsub.f32 (!%p2071_p4), %v3088_v54, %v789_v58 }
 0x14c   : > { %v661_v33 = vadd.f32 %v2294_v31, %v2262_v29  ;;  %v652_v35 = vpop.f32.mrb[13].mxu0  ;;  %v2263_v36 = vpop.f32.mrb[14].mxu1  ;;  %v870_v29 = vand.u32 (!%p2071_p4), 4294901760, %v3136_v20  ;;  %v880_v31 = vand.u32 (!%p2071_p4), 4294901760, %v3140_v23  ;;  %2523 = vmatpush3.bf16.msra.mxu0 (!%p2071_p4), %v2520_v22 }
 0x14d   : > { %v653_v37 = vadd.f32 %v652_v35, %v507_v32  ;;  %v2295_v39 = vpop.f32.mrb[14].mxu0  ;;  %v510_v40 = vpop.f32.mrb[15].mxu1  ;;  %703 = sbr.rel (%p2071_p4) target bundleno = 650 (0x28a), region = 86  ;;  %v3151_v32 = vsub.f32 (!%p2071_p4), %v744_v15, %v3142_v24  ;;  %v1025_v51 = vand.u32 (!%p2071_p4), 4294901760, %v3179_v60  ;;  %v1032_v54 = vand.u32 (!%p2071_p4), 4294901760, %v3195_v55 }
 0x14e   : > { %v681_v41 = vadd.f32 %v661_v33, %v375_v30  ;;  %v664_v42 = vadd.f32 %v2295_v39, %v2263_v36  ;;  %v655_v44 = vpop.f32.mrb[15].mxu0  ;;  %v1020_v30 = vand.u32 (!%p2071_p4), 4294901760, %v1019_v21  ;;  %v3153_v33 = vand.u32 (!%p2071_p4), 4294901760, %v747_v16  ;;  %2403 = vmatprep.mubr.f32.mxu0 (!%p2071_p4), %v870_v29 }
 0x14f   : > { %v679_v45 = vadd.f32 %v653_v37, %v373_v34  ;;  %v656_v46 = vadd.f32 %v655_v44, %v510_v40  ;;  %v711_v34 = vld [vmem:[#allocation2 + $0x38] sm:$0xff] (!%p2071_p4)  ;;  %v852_v36 = vand.u32 (!%p2071_p4), 4294901760, %v851_v26  ;;  %v862_v37 = vand.u32 (!%p2071_p4), 4294901760, %v861_v27  ;;  %v714_v61 = vld [vmem:[#allocation2 + $0x50] sm:$0xff] (!%p2071_p4)  ;;  %2404 = vmatmul.mubr.f32.gmra.mrb[2].mxu0 (!%p2071_p4), %v880_v31 }
 0x150   : > { %698 = vst.msk [vmem:[#allocation2 + $0x70] sm:$0xff] %vm683_vm1, %v681_v41  ;;  %v682_v47 = vadd.f32 %v664_v42, %v376_v38  ;;  %v712_v35 = vld [vmem:[#allocation2 + $0x40] sm:$0xff] (!%p2071_p4)  ;;  %v871_v38 = vsub.f32 (!%p2071_p4), %v3136_v20, %v870_v29  ;;  %v750_v39 = vsel (!%p2071_p4), %vm683_vm1, %v710_v25, 0  ;;  %v2496_v40 = vpack.c.bf16 (!%p2071_p4), %v1020_v30, %v1013_v28 }
 0x151   : > { %696 = vst.msk [vmem:[#allocation2 + $0x60] sm:$0xff] %vm683_vm1, %v679_v45  ;;  %v680_v48 = vadd.f32 %v656_v46, %v374_v43  ;;  %v881_v41 = vsub.f32 (!%p2071_p4), %v3140_v23, %v880_v31  ;;  %v890_v42 = vand.u32 (!%p2071_p4), 4294901760, %v3151_v32  ;;  %v3160_v43 = vsub.f32 (!%p2071_p4), %v747_v16, %v3153_v33  ;;  %2304 = vmatprep.mubr.f32.mxu1 (!%p2071_p4), %v852_v36  ;;  %v715_v13 = vld [vmem:[#allocation2 + $0x58] sm:$0xff] (!%p2071_p4) }
 0x152   : > { %699 = vst.msk [vmem:[#allocation2 + $0x78] sm:$0xff] %vm683_vm1, %v682_v47  ;;  %v713_v44 = vld [vmem:[#allocation2 + $0x48] sm:$0xff] (!%p2071_p4)  ;;  %v872_v45 = vand.u32 (!%p2071_p4), 4294901760, %v871_v38  ;;  %v3162_v46 = vand.u32 (!%p2071_p4), 4294901760, %v750_v39  ;;  %v753_v47 = vsel (!%p2071_p4), %vm683_vm1, %v711_v34, 0  ;;  %2305 = vmatmul.mubr.f32.vlgmr.msra.gmra.mrb[0].mxu1 (!%p2071_p4), %v862_v37  ;;  %2497 = vmatprep.subr.bf16.mxu1 (!%p2071_p4), %v2496_v40  ;;  %v762_v18 = vsel (!%p2071_p4), %vm683_vm1, %v714_v61, 0 }
 0x153   : > { %697 = vst.msk [vmem:[#allocation2 + $0x68] sm:$0xff] %vm683_vm1, %v680_v48  ;;  %v756_v48 = vsel (!%p2071_p4), %vm683_vm1, %v712_v35, 0  ;;  %v882_v49 = vand.u32 (!%p2071_p4), 4294901760, %v881_v41  ;;  %v891_v50 = vsub.f32 (!%p2071_p4), %v3151_v32, %v890_v42  ;;  %v900_v52 = vand.u32 (!%p2071_p4), 4294901760, %v3160_v43  ;;  %2499 = vmatpush3.bf16.msra.mxu1 (!%p2071_p4), %v2496_v40  ;;  %2406 = vmatprep.mubr.f32.mxu0 (!%p2071_p4), %v890_v42 }
 0x154   : > { %v3168_v53 = vand.u32 4294901760, %v753_v47  ;;  %2307 = vmatprep.mubr.f32.mxu1 %v872_v45  ;;  %v3171_v56 = vsub.f32 %v750_v39, %v3162_v46  ;;  %v3173_v57 = vand.u32 4294901760, %v756_v48  ;;  %v759_v59 = vsel %vm683_vm1, %v713_v44, 0 }
 0x155   : > { %v892_v62 = vand.u32 4294901760, %v891_v50  ;;  %v901_v3 = vsub.f32 %v3160_v43, %v900_v52  ;;  %v3185_v7 = vand.u32 4294901760, %v759_v59  ;;  %v1026_v22 = vsub.f32 %v3179_v60, %v1025_v51  ;;  %2407 = vmatmul.mubr.f32.gmra.mrb[4].mxu0 %v900_v52 }
 0x156   : > { %v3183_v4 = vsub.f32 %v753_v47, %v3168_v53  ;;  %v910_v8 = vand.u32 4294901760, %v3171_v56  ;;  %v3189_v11 = vsub.f32 %v756_v48, %v3173_v57  ;;  %2308 = vmatmul.mubr.f32.gmra.mrb[2].mxu1 %v882_v49  ;;  %v3208_v26 = vand.u32 4294901760, %v762_v18 }
 0x157   : > { %v902_v15 = vand.u32 4294901760, %v901_v3  ;;  %v3199_v17 = vsub.f32 %v759_v59, %v3185_v7  ;;  %2310 = vmatprep.mubr.f32.mxu1 %v892_v62  ;;  %v765_v27 = vsel %vm683_vm1, %v715_v13, 0  ;;  %v1027_v31 = vand.u32 4294901760, %v1026_v22  ;;  %v718_v40 = vld [vmem:[#allocation2 + $0x70] sm:$0xff] }
 0x158   : > { %v920_v16 = vand.u32 4294901760, %v3183_v4  ;;  %v911_v19 = vsub.f32 %v3171_v56, %v910_v8  ;;  %v930_v21 = vand.u32 4294901760, %v3189_v11  ;;  %v716_v28 = vld [vmem:[#allocation2 + $0x60] sm:$0xff]  ;;  %v1033_v34 = vsub.f32 %v3195_v55, %v1032_v54  ;;  %2409 = vmatprep.mubr.f32.mxu0 %v910_v8 }
 0x159   : > { %v940_v25 = vand.u32 4294901760, %v3199_v17  ;;  %v2524_v38 = vpack.c.bf16 %v1032_v54, %v1025_v51  ;;  %v3215_v39 = vsub.f32 %v762_v18, %v3208_v26  ;;  %v3217_v44 = vand.u32 4294901760, %v765_v27  ;;  %v719_v47 = vld [vmem:[#allocation2 + $0x78] sm:$0xff] }
 0x15a   : > { %v921_v58 = vsub.f32 %v3183_v4, %v920_v16  ;;  %v912_v29 = vand.u32 4294901760, %v911_v19  ;;  %v931_v30 = vsub.f32 %v3189_v11, %v930_v21  ;;  %v717_v35 = vld [vmem:[#allocation2 + $0x68] sm:$0xff]  ;;  %2311 = vmatmul.mubr.f32.gmra.mrb[4].mxu1 %v902_v15  ;;  %v1034_v42 = vand.u32 4294901760, %v1033_v34  ;;  %2410 = vmatmul.mubr.f32.gmra.mrb[6].mxu0 %v920_v16 }
 0x15b   : > { %v941_v37 = vsub.f32 %v3199_v17, %v940_v25  ;;  %v768_v45 = vsel %vm683_vm1, %v716_v28, 0  ;;  %2525 = vmatprep.subr.bf16.mxu0 %v2524_v38  ;;  %v950_v49 = vand.u32 4294901760, %v3215_v39  ;;  %v771_v52 = vsel %vm683_vm1, %v717_v35, 0  ;;  %2412 = vmatprep.mubr.f32.mxu0 %v930_v21 }
 0x15c   : > { %v922_v36 = vand.u32 4294901760, %v921_v58  ;;  %2313 = vmatprep.mubr.f32.mxu1 %v912_v29  ;;  %v932_v41 = vand.u32 4294901760, %v931_v30  ;;  %v3221_v50 = vand.u32 4294901760, %v768_v45  ;;  %v2500_v59 = vpack.c.bf16 %v1034_v42, %v1027_v31  ;;  %2527 = vmatpush3.bf16.msra.mxu0 %v2524_v38 }
 0x15d   : > { %v942_v48 = vand.u32 4294901760, %v941_v37  ;;  %v3225_v61 = vsub.f32 %v765_v27, %v3217_v44  ;;  %v3227_v62 = vand.u32 4294901760, %v771_v52  ;;  %v774_v3 = vsel %vm683_vm1, %v718_v40, 0  ;;  %2529 = vmatprep.subr.bf16.mxu0 %v3094_v63 }
 0x15e   : > { %2314 = vmatmul.mubr.f32.gmra.mrb[6].mxu1 %v922_v36  ;;  %v951_v8 = vsub.f32 %v3215_v39, %v950_v49  ;;  %v3232_v51 = vsub.f32 %v768_v45, %v3221_v50  ;;  %v3234_v13 = vand.u32 4294901760, %v774_v3  ;;  %v777_v15 = vsel %vm683_vm1, %v719_v47, 0  ;;  %2501 = vmatprep.subr.bf16.mxu1 %v2500_v59 }
 0x15f   : > { %2316 = vmatprep.mubr.f32.mxu1 %v932_v41  ;;  %v960_v16 = vand.u32 4294901760, %v3225_v61  ;;  %v3239_v18 = vsub.f32 %v771_v52, %v3227_v62  ;;  %v3241_v19 = vand.u32 4294901760, %v777_v15  ;;  %v2504_v21 = vpack.c.bf16 %v3108_v6, %v3100_v2  ;;  %2503 = vmatpush3.bf16.msra.mxu1 %v2500_v59 }
 0x160   : > { %v952_v22 = vand.u32 4294901760, %v951_v8  ;;  %v970_v54 = vand.u32 4294901760, %v3232_v51  ;;  %v3247_v58 = vsub.f32 %v774_v3, %v3234_v13  ;;  %2413 = vmatmul.mubr.f32.gmra.mrb[8].mxu0 %v940_v25  ;;  %v2508_v41 = vpack.c.bf16 %v3195_v55, %v3179_v60 }
 0x161   : > { %v961_v27 = vsub.f32 %v3225_v61, %v960_v16  ;;  %v980_v28 = vand.u32 4294901760, %v3239_v18  ;;  %v3252_v29 = vsub.f32 %v777_v15, %v3241_v19  ;;  %2505 = vmatprep.subr.bf16.mxu1 %v2504_v21  ;;  %2415 = vmatprep.mubr.f32.mxu0 %v950_v49 }
 0x162   : > { %2317 = vmatmul.mubr.f32.gmra.mrb[8].mxu1 %v942_v48  ;;  %v971_v2 = vsub.f32 %v3232_v51, %v970_v54  ;;  %v990_v6 = vand.u32 4294901760, %v3247_v58 }
 0x163   : > { %2319 = vmatprep.mubr.f32.mxu1 %v952_v22  ;;  %v962_v30 = vand.u32 4294901760, %v961_v27  ;;  %v981_v31 = vsub.f32 %v3239_v18, %v980_v28  ;;  %v1000_v25 = vand.u32 4294901760, %v3252_v29 }
 0x164   : > { %v972_v34 = vand.u32 4294901760, %v971_v2  ;;  %v991_v35 = vsub.f32 %v3247_v58, %v990_v6  ;;  %2416 = vmatmul.mubr.f32.gmra.mrb[10].mxu0 %v960_v16 }
 0x165   : > { %2418 = vmatprep.mubr.f32.mxu0 %v970_v54  ;;  %v982_v36 = vand.u32 4294901760, %v981_v31  ;;  %v1001_v37 = vsub.f32 %v3252_v29, %v1000_v25 }
 0x166   : > { %2320 = vmatmul.mubr.f32.gmra.mrb[10].mxu1 %v962_v30  ;;  %v992_v38 = vand.u32 4294901760, %v991_v35 }
 0x167   : > { %2322 = vmatprep.mubr.f32.mxu1 %v972_v34  ;;  %v1002_v40 = vand.u32 4294901760, %v1001_v37 }
 0x168   : > { %2419 = vmatmul.mubr.f32.gmra.mrb[12].mxu0 %v980_v28 }
 0x169   : > { %2421 = vmatprep.mubr.f32.mxu0 %v990_v6 }
 0x16a   : > { %2323 = vmatmul.mubr.f32.gmra.mrb[12].mxu1 %v982_v36 }
 0x16b   : > { %2325 = vmatprep.mubr.f32.mxu1 %v992_v38 }
 0x16c   : > { %2422 = vmatmul.mubr.f32.gmra.mrb[14].mxu0 %v1000_v25 }
 0x16d   : > { %2432 = vmatprep.mubr.f32.mxu0 %v3096_v0 }
 0x16e   : > { %2326 = vmatmul.mubr.f32.gmra.mrb[14].mxu1 %v1002_v40 }
 0x16f   : > { %2336 = vmatprep.mubr.f32.mxu1 %v3096_v0 }
 0x170   : > { %2433 = vmatmul.mubr.f32.vlgmr.msra.gmra.mrb[0].mxu0 %v3098_v1 }
 0x171   : > { %2435 = vmatprep.mubr.f32.mxu0 %v3121_v12  ;;  %2531 = vmatpush3.bf16.msra.mxu0 %v3094_v63  ;;  %v3333_v63 = vld [vmem:[%s3440_s4] ss:$0 sm:$0xff] }
 0x172   : > { %2337 = vmatmul.mubr.f32.vlgmr.msra.gmra.mrb[0].mxu1 %v3098_v1  ;;  %2533 = vmatprep.subr.bf16.mxu0 %v3106_v5 }
 0x173   : > { %2507 = vmatpush3.bf16.msra.mxu1 %v2504_v21  ;;  %2339 = vmatprep.mubr.f32.mxu1 %v3121_v12 }
 0x174   : > { %2509 = vmatprep.subr.bf16.mxu1 %v2508_v41  ;;  %2436 = vmatmul.mubr.f32.gmra.mrb[2].mxu0 %v3126_v14 }
 0x175   : > { %2438 = vmatprep.mubr.f32.mxu0 %v3142_v24  ;;  %2535 = vmatpush3.bf16.msra.mxu0 %v3106_v5 }
 0x176   : > { %2340 = vmatmul.mubr.f32.gmra.mrb[2].mxu1 %v3126_v14 }
 0x177   : > { %2342 = vmatprep.mubr.f32.mxu1 %v3142_v24  ;;  %2511 = vmatpush3.bf16.msra.mxu1 %v2508_v41 }
 0x178   : > { %2439 = vmatmul.mubr.f32.gmra.mrb[4].mxu0 %v3153_v33 }
 0x179   : > { %2441 = vmatprep.mubr.f32.mxu0 %v3162_v46 }
 0x17a   : > { %2343 = vmatmul.mubr.f32.gmra.mrb[4].mxu1 %v3153_v33 }
 0x17b   : > { %2345 = vmatprep.mubr.f32.mxu1 %v3162_v46 }
 0x17c   : > { %2442 = vmatmul.mubr.f32.gmra.mrb[6].mxu0 %v3168_v53 }
 0x17d   : > { %2444 = vmatprep.mubr.f32.mxu0 %v3173_v57 }
 0x17e   : > { %2346 = vmatmul.mubr.f32.gmra.mrb[6].mxu1 %v3168_v53 }
 0x17f   : > { %2348 = vmatprep.mubr.f32.mxu1 %v3173_v57 }
 0x180   : > { %2445 = vmatmul.mubr.f32.gmra.mrb[8].mxu0 %v3185_v7 }
 0x181   : > { %2447 = vmatprep.mubr.f32.mxu0 %v3208_v26 }
 0x182   : > { %2349 = vmatmul.mubr.f32.gmra.mrb[8].mxu1 %v3185_v7 }
 0x183   : > { %2351 = vmatprep.mubr.f32.mxu1 %v3208_v26 }
 0x184   : > { %2448 = vmatmul.mubr.f32.gmra.mrb[10].mxu0 %v3217_v44 }
 0x185   : > { %2450 = vmatprep.mubr.f32.mxu0 %v3221_v50 }
 0x186   : > { %2352 = vmatmul.mubr.f32.gmra.mrb[10].mxu1 %v3217_v44 }
 0x187   : > { %2354 = vmatprep.mubr.f32.mxu1 %v3221_v50 }
 0x188   : > { %2451 = vmatmul.mubr.f32.gmra.mrb[12].mxu0 %v3227_v62 }
 0x189   : > { %2453 = vmatprep.mubr.f32.mxu0 %v3234_v13 }
 0x18a   : > { %2355 = vmatmul.mubr.f32.gmra.mrb[12].mxu1 %v3227_v62 }
 0x18b   : > { %2357 = vmatprep.mubr.f32.mxu1 %v3234_v13 }
 0x18c   : > { %2454 = vmatmul.mubr.f32.gmra.mrb[14].mxu0 %v3241_v19 }
 0x18d   : > { %2464 = vmatprep.mubr.f32.mxu0 %v3096_v0 }
 0x18e   : > { %2358 = vmatmul.mubr.f32.gmra.mrb[14].mxu1 %v3241_v19 }
 0x18f   : > { %2368 = vmatprep.mubr.f32.mxu1 %v3115_v9 }
 0x190   : > { %2465 = vmatmul.mubr.f32.vlgmr.msra.gmra.mrb[0].mxu0 %v3098_v1 }
 0x191   : > { %2467 = vmatprep.mubr.f32.mxu0 %v3121_v12 }
 0x192   : > { %2369 = vmatmul.mubr.f32.vlgmr.msra.gmra.mrb[0].mxu1 %v3118_v10 }
 0x193   : > { %2371 = vmatprep.mubr.f32.mxu1 %v3136_v20 }
 0x194   : > { %2468 = vmatmul.mubr.f32.gmra.mrb[2].mxu0 %v3126_v14 }
 0x195   : > { %2470 = vmatprep.mubr.f32.mxu0 %v3142_v24 }
 0x196   : > { %2372 = vmatmul.mubr.f32.gmra.mrb[2].mxu1 %v3140_v23 }
 0x197   : > { %2374 = vmatprep.mubr.f32.mxu1 %v3151_v32 }
 0x198   : > { %2471 = vmatmul.mubr.f32.gmra.mrb[4].mxu0 %v3153_v33 }
 0x199   : > { %2473 = vmatprep.mubr.f32.mxu0 %v3162_v46 }
 0x19a   : > { %2375 = vmatmul.mubr.f32.gmra.mrb[4].mxu1 %v3160_v43 }
 0x19b   : > { %2377 = vmatprep.mubr.f32.mxu1 %v3171_v56 }
 0x19c   : > { %2474 = vmatmul.mubr.f32.gmra.mrb[6].mxu0 %v3168_v53 }
 0x19d   : > { %2476 = vmatprep.mubr.f32.mxu0 %v3173_v57 }
 0x19e   : > { %2378 = vmatmul.mubr.f32.gmra.mrb[6].mxu1 %v3183_v4 }
 0x19f   : > { %2380 = vmatprep.mubr.f32.mxu1 %v3189_v11 }
 0x1a0   : > { %2477 = vmatmul.mubr.f32.gmra.mrb[8].mxu0 %v3185_v7 }
 0x1a1   : > { %2479 = vmatprep.mubr.f32.mxu0 %v3208_v26 }
 0x1a2   : > { %2381 = vmatmul.mubr.f32.gmra.mrb[8].mxu1 %v3199_v17 }
 0x1a3   : > { %2383 = vmatprep.mubr.f32.mxu1 %v3215_v39 }
 0x1a4   : > { %2480 = vmatmul.mubr.f32.gmra.mrb[10].mxu0 %v3217_v44 }
 0x1a5   : > { %2482 = vmatprep.mubr.f32.mxu0 %v3221_v50 }
 0x1a6   : > { %2384 = vmatmul.mubr.f32.gmra.mrb[10].mxu1 %v3225_v61 }
 0x1a7   : > { %2386 = vmatprep.mubr.f32.mxu1 %v3232_v51 }
 0x1a8   : > { %2483 = vmatmul.mubr.f32.gmra.mrb[12].mxu0 %v3227_v62 }
 0x1a9   : > { %2485 = vmatprep.mubr.f32.mxu0 %v3234_v13 }
 0x1aa   : > { %2387 = vmatmul.mubr.f32.gmra.mrb[12].mxu1 %v3239_v18 }
 0x1ab   : > { %2389 = vmatprep.mubr.f32.mxu1 %v3247_v58 }
 0x1ac   : > { %2486 = vmatmul.mubr.f32.gmra.mrb[14].mxu0 %v3241_v19 }
 0x1ae   : > { %2390 = vmatmul.mubr.f32.gmra.mrb[14].mxu1 %v3252_v29 }
 0x263   : > { %v2466_v0 = vpop.f32.mrb[0].mxu0 }
 0x264   : > { %v1815_v5 = vpop.f32.mrb[1].mxu0 }
 0x265   : > { %v2370_v1 = vpop.f32.mrb[0].mxu1 }
 0x266   : > { %v2552_v9 = vadd.f32 %v2370_v1, %v3333_v63  ;;  %v1265_v10 = vpop.f32.mrb[1].mxu1 }
 0x267   : > { %v2554_v12 = vadd.f32 %v3333_v63, %v1265_v10  ;;  %v2469_v20 = vpop.f32.mrb[2].mxu0 }
 0x268   : > { %v2553_v14 = vadd.f32 %v2552_v9, %v2466_v0  ;;  %v1827_v32 = vpop.f32.mrb[3].mxu0 }
 0x269   : > { %v2555_v23 = vadd.f32 %v2554_v12, %v1815_v5  ;;  %v2373_v24 = vpop.f32.mrb[2].mxu1 }
 0x26a   : > { %v1910_v33 = vmax.f32 %v2553_v14, 0.0  ;;  %v2556_v43 = vadd.f32 %v2373_v24, %v3333_v63  ;;  %v1279_v46 = vpop.f32.mrb[3].mxu1 }
 0x26b   : > { %v1909_v53 = vmax.f32 %v2555_v23, 0.0  ;;  %v2558_v56 = vadd.f32 %v3333_v63, %v1279_v46  ;;  %v2472_v60 = vpop.f32.mrb[4].mxu0 }
 0x26c   : > { %1926 = vst [vmem:[%s3007_s8 + $0x8] sm:$0xff] %v1910_v33  ;;  %v2557_v57 = vadd.f32 %v2556_v43, %v2469_v20  ;;  %v1839_v11 = vpop.f32.mrb[5].mxu0 }
 0x26d   : > { %1925 = vst [vmem:[%s3007_s8] sm:$0xff] %v1909_v53  ;;  %v2559_v4 = vadd.f32 %v2558_v56, %v1827_v32  ;;  %v2376_v7 = vpop.f32.mrb[4].mxu1 }
 0x26e   : > { %v1912_v55 = vmax.f32 %v2557_v57, 0.0  ;;  %v2560_v17 = vadd.f32 %v2376_v7, %v3333_v63  ;;  %v1293_v26 = vpop.f32.mrb[5].mxu1 }
 0x26f   : > { %v1911_v39 = vmax.f32 %v2559_v4, 0.0  ;;  %v2562_v42 = vadd.f32 %v3333_v63, %v1293_v26  ;;  %v2475_v45 = vpop.f32.mrb[6].mxu0 }
 0x270   : > { %1928 = vst [vmem:[%s3007_s8 + $0x18] sm:$0xff] %v1912_v55  ;;  %v2561_v44 = vadd.f32 %v2560_v17, %v2472_v60  ;;  %v1851_v49 = vpop.f32.mrb[7].mxu0 }
 0x271   : > { %1927 = vst [vmem:[%s3007_s8 + $0x10] sm:$0xff] %v1911_v39  ;;  %v2563_v47 = vadd.f32 %v2562_v42, %v1839_v11  ;;  %v2379_v48 = vpop.f32.mrb[6].mxu1 }
 0x272   : > { %v1914_v50 = vmax.f32 %v2561_v44, 0.0  ;;  %v2564_v52 = vadd.f32 %v2379_v48, %v3333_v63  ;;  %v1307_v59 = vpop.f32.mrb[7].mxu1 }
 0x273   : > { %v1913_v61 = vmax.f32 %v2563_v47, 0.0  ;;  %v2566_v62 = vadd.f32 %v3333_v63, %v1307_v59  ;;  %v2478_v8 = vpop.f32.mrb[8].mxu0 }
 0x274   : > { %1930 = vst [vmem:[%s3007_s8 + $0x28] sm:$0xff] %v1914_v50  ;;  %v2565_v3 = vadd.f32 %v2564_v52, %v2475_v45  ;;  %v1863_v15 = vpop.f32.mrb[9].mxu0 }
 0x275   : > { %1929 = vst [vmem:[%s3007_s8 + $0x20] sm:$0xff] %v1913_v61  ;;  %v2567_v51 = vadd.f32 %v2566_v62, %v1851_v49  ;;  %v2382_v13 = vpop.f32.mrb[8].mxu1 }
 0x276   : > { %v1916_v16 = vmax.f32 %v2565_v3, 0.0  ;;  %v2568_v18 = vadd.f32 %v2382_v13, %v3333_v63  ;;  %v1321_v19 = vpop.f32.mrb[9].mxu1 }
 0x277   : > { %v1915_v21 = vmax.f32 %v2567_v51, 0.0  ;;  %v2570_v22 = vadd.f32 %v3333_v63, %v1321_v19  ;;  %v2481_v58 = vpop.f32.mrb[10].mxu0 }
 0x278   : > { %1932 = vst [vmem:[%s3007_s8 + $0x38] sm:$0xff] %v1916_v16  ;;  %v2569_v54 = vadd.f32 %v2568_v18, %v2478_v8  ;;  %v1875_v29 = vpop.f32.mrb[11].mxu0 }
 0x279   : > { %1931 = vst [vmem:[%s3007_s8 + $0x30] sm:$0xff] %v1915_v21  ;;  %v2571_v27 = vadd.f32 %v2570_v22, %v1863_v15  ;;  %v2385_v28 = vpop.f32.mrb[10].mxu1 }
 0x27a   : > { %v1918_v2 = vmax.f32 %v2569_v54, 0.0  ;;  %v2572_v6 = vadd.f32 %v2385_v28, %v3333_v63  ;;  %v1335_v30 = vpop.f32.mrb[11].mxu1 }
 0x27b   : > { %v1917_v31 = vmax.f32 %v2571_v27, 0.0  ;;  %v2574_v25 = vadd.f32 %v3333_v63, %v1335_v30  ;;  %v2484_v35 = vpop.f32.mrb[12].mxu0 }
 0x27c   : > { %1934 = vst [vmem:[%s3007_s8 + $0x48] sm:$0xff] %v1918_v2  ;;  %v2573_v34 = vadd.f32 %v2572_v6, %v2481_v58  ;;  %v1887_v38 = vpop.f32.mrb[13].mxu0 }
 0x27d   : > { %1933 = vst [vmem:[%s3007_s8 + $0x40] sm:$0xff] %v1917_v31  ;;  %v2575_v36 = vadd.f32 %v2574_v25, %v1875_v29  ;;  %v2388_v37 = vpop.f32.mrb[12].mxu1 }
 0x27e   : > { %v1920_v40 = vmax.f32 %v2573_v34, 0.0  ;;  %v2576_v41 = vadd.f32 %v2388_v37, %v3333_v63  ;;  %v1349_v0 = vpop.f32.mrb[13].mxu1 }
 0x27f   : > { %v1919_v1 = vmax.f32 %v2575_v36, 0.0  ;;  %v2578_v5 = vadd.f32 %v3333_v63, %v1349_v0  ;;  %v2487_v10 = vpop.f32.mrb[14].mxu0 }
 0x280   : > { %1936 = vst [vmem:[%s3007_s8 + $0x58] sm:$0xff] %v1920_v40  ;;  %v2577_v9 = vadd.f32 %v2576_v41, %v2484_v35  ;;  %v1899_v20 = vpop.f32.mrb[15].mxu0 }
 0x281   : > { %1935 = vst [vmem:[%s3007_s8 + $0x50] sm:$0xff] %v1919_v1  ;;  %v2579_v12 = vadd.f32 %v2578_v5, %v1887_v38  ;;  %v2391_v14 = vpop.f32.mrb[14].mxu1 }
 0x282   : > { %v1922_v23 = vmax.f32 %v2577_v9, 0.0  ;;  %v2580_v24 = vadd.f32 %v2391_v14, %v3333_v63  ;;  %v1363_v32 = vpop.f32.mrb[15].mxu1 }
 0x283   : > { %v1921_v33 = vmax.f32 %v2579_v12, 0.0  ;;  %v2582_v43 = vadd.f32 %v3333_v63, %v1363_v32 }
 0x284   : > { %1938 = vst [vmem:[%s3007_s8 + $0x68] sm:$0xff] %v1922_v23  ;;  %v2581_v46 = vadd.f32 %v2580_v24, %v2487_v10 }
 0x285   : > { %1937 = vst [vmem:[%s3007_s8 + $0x60] sm:$0xff] %v1921_v33  ;;  %v2583_v53 = vadd.f32 %v2582_v43, %v1899_v20 }
 0x286   : > { %v1924_v56 = vmax.f32 %v2581_v46, 0.0 }
 0x287   : > { %v1923_v57 = vmax.f32 %v2583_v53, 0.0 }
 0x288   : > { %1940 = vst [vmem:[%s3007_s8 + $0x78] sm:$0xff] %v1924_v56 }
 0x289   : > { %1939 = vst [vmem:[%s3007_s8 + $0x70] sm:$0xff] %v1923_v57 }
 0x28a PF: > { %s2079_s28 = sshll.u32 %s2852_s24, 11  ;;  %s1955_s12 = sshll.u32 %s3007_s8, 4  ;;  %s3374_s12 = int_to_ptr.vmem [resolvable:$true] %s1955_s12 }
 0x28b   : > { %s3371_s21 = scalar_lea.hbm %s3441_s5, %s2079_s28  ;;  %s3448_s13 = sand.u32 1, %s2832_s19  }
 0x28c   : > { %s3378_s10 = scalar_lea.sflag [#allocation5], %s3448_s13  ;;  %s2754_s7 = scalar_lea.vmem %s3374_s12, 2048 }
 0x28d   : > { %p2755_p5 = scmp.ne.s32.totalorder %s3374_s12, %s2754_s7  ;;  %s2867_s24 = smov [#allocation4]  }
 0x28e   : > { %s2758_s6 = sshll.u32 %s2867_s24, 4  ;;  %s2759_s6 = int_to_ptr.vmem [resolvable:$false] %s2758_s6 }
 0x28f   : > { %p2756_p6 = pnand %p2755_p5, %p2972_p7  ;;  %s2760_s23 = scalar_lea.vmem %s2759_s6, 4096 }
 0x290   : > { %p2761_p9 = scmp.lt.s32.totalorder %s3374_s12, %s2759_s6  ;;  %p2762_p10 = scmp.lt.s32.totalorder %s2760_s23, %s2754_s7 }
 0x291   : > { %p2757_p8 = pneg %p2756_p6 }
 0x292   : > { %p2763_p11 = por %p2762_p10, %p2761_p9 }
 0x294   : > { %p2764_p13 = pnand %p2763_p11, %p2757_p8 }
 0x296   : > { %2767 = shalt.err (!%p2764_p13)
}
 0x297   : > { %s2768_s8 = scalar_lea.hbm %s3371_s21, 2048  ;;  %s2772_s9 = scalar_lea.hbm %s3441_s5, 4096 }
 0x298   : > { %p2769_p0 = scmp.ne.s32.totalorder %s3371_s21, %s2768_s8  ;;  %p2773_p3 = scmp.lt.u32.totalorder %s3371_s21, %s3441_s5 }
 0x299   : > { %p2774_p4 = scmp.lt.u32.totalorder %s2772_s9, %s2768_s8  ;;  %p2776_p6 = scmp.lt.u32.totalorder %s2768_s8, %s3371_s21 }
 0x29a   : > { %p2770_p1 = pnand %p2769_p0, %p2972_p7 }
 0x29b   : > { %p2775_p5 = por %p2774_p4, %p2773_p3 }
 0x29c   : > { %p2771_p2 = pneg %p2770_p1 }
 0x29d   : > { %p2777_p8 = por %p2776_p6, %p2775_p5 }
 0x29f   : > { %p2778_p9 = pnand %p2777_p8, %p2771_p2 }
 0x2a1   : > { %2781 = shalt.err (!%p2778_p9)
}
 0x2a2   : > { %s2868_s7 = smov 128   ;;  %s2869_s24 = smov 8  }
 0x2a3   : > { %2648 = dma.vmem_to_hbm [thread:$0]  (%p2972_p7), %s3374_s12, 2048, %s3371_s21, %s3378_s10, %s2868_s7, %s2868_s7, %s2869_s24  }
 0x2a4 PF: > { %p2654_p10 = scmp.ge.s32.totalorder %s2864_s27, 2  ;;  %s1970_s6 = sand.u32 1, %s2828_s18  }
 0x2a5   : > { %s1971_s23 = scalar_lea.sflag [#allocation5], %s1970_s6 }
 0x2a6   : > { %p2651_p11 = pnand %p2654_p10, %p2980_p12 }
 0x2a8   : > { %2823 = dma.done.wait (!%p2651_p11), %s1971_s23, 2048  }
 0x2a9   : > { %2825 = vsyncadd (!%p2651_p11), %s1971_s23, 4294965248  ;;  %s18_s27 = sadd.s32 1, %s2864_s27   ;;  %s3449_s11 = sld [smem:[#allocation7_spill]] }
 0x2aa   : > { %p15_p13 = scmp.ge.s32.totalorder %s18_s27, 6   ;;  %s3450_s18 = smov %s2832_s19 }
 0x2ab   : > { %s3451_s19 = smov %s2836_s20  ;;  %s3452_s20 = smov %s2985_s15 }
 0x2ac   : > { %s3453_s21 = smov %s2844_s22  ;;  %s3454_s22 = smov %s2988_s16 }
 0x2ad   : > { %s3455_s23 = smov %s2856_s25  ;;  %s3456_s24 = smov %s2860_s26 }
 0x2ae   : > { %s3457_s25 = smov %s3460_s30  ;;  %17 = sbr.rel (!%p15_p13) target bundleno = 6 (0x6), region = 128 }
 0x2af   : > { %s3458_s26 = smov %s3449_s11 }
 0x2b5   :  { %1976 = vsyncpa [#allocation5], 1 }
 0x2b6   :  { %1978 = vsyncpa [#allocation5 + $0x1], 1 }

</bundles_post_ra>
